<compile_context>
chip_gen: v7x
topology: tpu7x:2x2x1
jax: 0.10.0
libtpu: 0.0.40
codegen_flags: <defaults>
</compile_context>

<pallas_src>
import numpy as np
import jax
import jax.numpy as jnp
from jax import lax
from jax.experimental import pallas as pl
from jax.experimental.pallas import tpu as pltpu

DIM_OUT = 51          # fixed by the module: nn.Linear(n_hidden, 51)
DIM_PAD = 128         # lane-padded output width (sliced back to 51 outside)
LN_EPS = 1e-5         # torch.nn.LayerNorm default


# --------------------------------------------------------------------------
# Kernel 1: full node path
#   node_encoder (Linear -> PReLU -> Linear)
#   out_layer    (Linear -> LayerNorm -> PReLU -> Linear(51, lane-padded 128))
#   scatter_sum over graphs (in-kernel one-hot matmul, accumulated over tiles)
# Grid: (num_splits [parallel], tiles_per_split [arbitrary/reduction])
# --------------------------------------------------------------------------
def node_path_kernel(x_ref, batch_ref,
                     w1_ref, b1_ref, w2_ref, b2_ref,
                     w3_ref, b3_ref, lnw_ref, lnb_ref,
                     w4_ref, b4_ref,
                     a1_ref, a2_ref,          # SMEM scalars (PReLU slopes)
                     out_ref):
    @pl.when(pl.program_id(1) == 0)
    def _():
        out_ref[...] = jnp.zeros_like(out_ref)

    x = x_ref[...].astype(jnp.float32)

    # --- GN_encoder.node_encoder ---
    h = jnp.dot(x, w1_ref[...], preferred_element_type=jnp.float32) + b1_ref[...]
    a1 = a1_ref[0, 0]
    h = jnp.where(h > 0, h, a1 * h)                       # PReLU (single shared param)
    h = jnp.dot(h, w2_ref[...], preferred_element_type=jnp.float32) + b2_ref[...]

    # --- out_layer ---
    h2 = jnp.dot(h, w3_ref[...], preferred_element_type=jnp.float32) + b3_ref[...]
    inv_h = jnp.float32(1.0 / h2.shape[-1])
    s1 = jnp.sum(h2, axis=-1, keepdims=True)              # one-pass LayerNorm stats
    s2 = jnp.sum(h2 * h2, axis=-1, keepdims=True)
    mean = s1 * inv_h
    var = s2 * inv_h - mean * mean
    h2 = (h2 - mean) * lax.rsqrt(var + LN_EPS) * lnw_ref[...] + lnb_ref[...]
    a2 = a2_ref[0, 0]
    h2 = jnp.where(h2 > 0, h2, a2 * h2)                   # PReLU
    dos = jnp.dot(h2, w4_ref[...], preferred_element_type=jnp.float32) + b4_ref[...]

    # --- scatter_sum(dos, batch): build one-hot in-kernel from int32 ids ---
    tile_n = dos.shape[0]
    num_graphs = out_ref.shape[0]
    seg = batch_ref[...]                                   # (tile_n, 1) int32; pad rows = -1
    graph_ids = lax.broadcasted_iota(jnp.int32, (tile_n, num_graphs), 1)
    oh = (seg == graph_ids).astype(jnp.float32)            # exact {0,1}; pad rows all-zero
    out_ref[...] += lax.dot_general(
        oh, dos,
        dimension_numbers=(((0,), (0,)), ((), ())),
        preferred_element_type=jnp.float32)


def node_dos_forward(x, batch, num_graphs, p, *, tile_n=1024, num_splits=2):
    N, F = x.shape
    B = int(num_graphs)
    H = p["w1"].shape[1]

    # Adaptive tile: big for real workloads, shrinks for tiny test inputs.
    per_split = -(-N // num_splits)
    tile_n = int(min(tile_n, max(8, ((per_split + 7) // 8) * 8)))
    tiles_per_split = -(-per_split // tile_n)
    Np = num_splits * tiles_per_split * tile_n
    pad = Np - N

    batch2d = batch.reshape(-1, 1).astype(jnp.int32)
    if pad:  # padded rows get batch id -1 -> all-zero one-hot -> no contribution
        x = jnp.pad(x, ((0, pad), (0, 0)))
        batch2d = jnp.pad(batch2d, ((0, pad), (0, 0)), constant_values=-1)

    # Lane-pad the final projection to 128 output columns (zeros -> exact).
    w4p = jnp.pad(p["w4"], ((0, 0), (0, DIM_PAD - DIM_OUT)))
    b4p = jnp.pad(p["b4"], ((0, 0), (0, DIM_PAD - DIM_OUT)))

    const = lambda c, i: (0, 0)
    row = lambda c, i: (c * tiles_per_split + i, 0)
    smem = pl.BlockSpec(memory_space=pltpu.MemorySpace.SMEM)

    out_split = pl.pallas_call(
        node_path_kernel,
        out_shape=jax.ShapeDtypeStruct((num_splits, B, DIM_PAD), jnp.float32),
        grid_spec=pltpu.PrefetchScalarGridSpec(
            num_scalar_prefetch=0,
            grid=(num_splits, tiles_per_split),
            in_specs=[
                pl.BlockSpec((tile_n, F), row),            # x tile
                pl.BlockSpec((tile_n, 1), row),            # batch-id column (int32)
                pl.BlockSpec((F, H), const),               # w1
                pl.BlockSpec((1, H), const),               # b1
                pl.BlockSpec((H, H), const),               # w2
                pl.BlockSpec((1, H), const),               # b2
                pl.BlockSpec((H, H), const),               # w3
                pl.BlockSpec((1, H), const),               # b3
                pl.BlockSpec((1, H), const),               # ln weight
                pl.BlockSpec((1, H), const),               # ln bias
                pl.BlockSpec((H, DIM_PAD), const),         # w4 (lane-padded)
                pl.BlockSpec((1, DIM_PAD), const),         # b4 (lane-padded)
                smem,                                      # prelu a1 (scalar path)
                smem,                                      # prelu a2 (scalar path)
            ],
            # Per-split resident accumulator, lane-dense (128 wide).
            out_specs=pl.BlockSpec((None, B, DIM_PAD), lambda c, i: (c, 0, 0)),
        ),
        compiler_params=pltpu.CompilerParams(
            dimension_semantics=("parallel", "arbitrary"),
            vmem_limit_bytes=32 * 1024 * 1024),
    )(x, batch2d, p["w1"], p["b1"], p["w2"], p["b2"],
      p["w3"], p["b3"], p["ln_w"], p["ln_b"], w4p, b4p, p["a1"], p["a2"])

    # Combine per-core partial sums and drop the padded lanes.
    return out_split.sum(axis=0)[:, :DIM_OUT]


# --------------------------------------------------------------------------
# Kernel 2: edge path  (edge_attr = smooth_cutoff(|edge_vec|/4) * edge_shift,
# then edge_encoder MLP).  The module discards this result (`x, _ = ...`);
# the main forward therefore skips it by default, but the tiled kernel is
# provided (and exercised once in __main__) for completeness.
# TODO(synk): smooth_cutoff is not defined in the provided source; using the
#             standard phDOS-e3nn definition (raised-cosine on u = 2*(x-1)).
# --------------------------------------------------------------------------
def edge_path_kernel(ev_ref, es_ref, w1_ref, b1_ref, w2_ref, b2_ref, a_ref,
                     out_ref):
    ev = ev_ref[...].astype(jnp.float32)
    length = jnp.sqrt(jnp.sum(ev * ev, axis=1, keepdims=True))   # norm(dim=1)
    u = 2.0 * (length / 4.0 - 1.0)
    y = 0.5 * (1.0 - jnp.cos(jnp.pi * u))
    y = jnp.where(u > 0.0, 0.0, y)
    y = jnp.where(u < -1.0, 1.0, y)
    edge_attr = y * es_ref[...]                                  # [tile_e, n_bond_feats]

    h = jnp.dot(edge_attr, w1_ref[...], preferred_element_type=jnp.float32) + b1_ref[...]
    a = a_ref[0, 0]
    h = jnp.where(h > 0, h, a * h)
    h = jnp.dot(h, w2_ref[...], preferred_element_type=jnp.float32) + b2_ref[...]
    out_ref[...] = h


def edge_encoder_forward(edge_vec, edge_shift, p, *, tile_e=512):
    E, D3 = edge_vec.shape
    Fb = edge_shift.shape[1]
    H = p["we1"].shape[1]

    tile_e = int(min(tile_e, max(8, ((E + 7) // 8) * 8)))
    Ep = -(-E // tile_e) * tile_e
    pad = Ep - E
    if pad:
        edge_vec = jnp.pad(edge_vec, ((0, pad), (0, 0)))
        edge_shift = jnp.pad(edge_shift, ((0, pad), (0, 0)))

    const = lambda i: (0, 0)
    out = pl.pallas_call(
        edge_path_kernel,
        out_shape=jax.ShapeDtypeStruct((Ep, H), jnp.float32),
        grid_spec=pltpu.PrefetchScalarGridSpec(
            num_scalar_prefetch=0,
            grid=(Ep // tile_e,),
            in_specs=[
                pl.BlockSpec((tile_e, D3), lambda i: (i, 0)),    # edge_vec tile
                pl.BlockSpec((tile_e, Fb), lambda i: (i, 0)),    # edge_shift tile
                pl.BlockSpec((Fb, H), const),                    # we1
                pl.BlockSpec((1, H), const),                     # be1
                pl.BlockSpec((H, H), const),                     # we2
                pl.BlockSpec((1, H), const),                     # be2
                pl.BlockSpec(memory_space=pltpu.MemorySpace.SMEM),  # prelu ae1
            ],
            out_specs=pl.BlockSpec((tile_e, H), lambda i: (i, 0)),
        ),
        compiler_params=pltpu.CompilerParams(
            dimension_semantics=("parallel",),
            vmem_limit_bytes=32 * 1024 * 1024),
    )(edge_vec, edge_shift, p["we1"], p["be1"], p["we2"], p["be2"], p["ae1"])
    return out[:E]


# --------------------------------------------------------------------------
# Parameter init (deterministic, torch-Linear-style uniform bounds)
# --------------------------------------------------------------------------
def linear_params(key, fan_in, fan_out):
    k1, k2 = jax.random.split(key)
    bound = 1.0 / np.sqrt(fan_in)
    w = jax.random.uniform(k1, (fan_in, fan_out), jnp.float32, -bound, bound)
    b = jax.random.uniform(k2, (1, fan_out), jnp.float32, -bound, bound)
    return w, b


def init_params(key, n_atom_feats, n_bond_feats, n_hidden):
    ks = jax.random.split(key, 6)
    p = {}
    p["w1"], p["b1"] = linear_params(ks[0], n_atom_feats, n_hidden)   # node enc L1
    p["w2"], p["b2"] = linear_params(ks[1], n_hidden, n_hidden)       # node enc L2
    p["w3"], p["b3"] = linear_params(ks[2], n_hidden, n_hidden)       # out_layer L1
    p["w4"], p["b4"] = linear_params(ks[3], n_hidden, DIM_OUT)        # out_layer L2
    p["we1"], p["be1"] = linear_params(ks[4], n_bond_feats, n_hidden) # edge enc L1
    p["we2"], p["be2"] = linear_params(ks[5], n_hidden, n_hidden)     # edge enc L2
    p["a1"] = jnp.full((1, 1), 0.25, jnp.float32)    # PReLU init (torch default)
    p["a2"] = jnp.full((1, 1), 0.25, jnp.float32)
    p["ae1"] = jnp.full((1, 1), 0.25, jnp.float32)
    p["ln_w"] = jnp.ones((1, n_hidden), jnp.float32)
    p["ln_b"] = jnp.zeros((1, n_hidden), jnp.float32)
    return p


# --------------------------------------------------------------------------
# Full forward (glue in plain JAX, hot path in Pallas)
# --------------------------------------------------------------------------
def mlp2_phonon_forward(g, params, num_graphs, *, compute_edge_embedding=False):
    if compute_edge_embedding:
        # The module computes and then discards this; skipped by default.
        _ = edge_encoder_forward(g["edge_vec"], g["edge_shift"], params)
    dos_vector3 = node_dos_forward(g["x"], g["batch"], num_graphs, params)
    return dos_vector3


def reference_forward(g, p, num_graphs):
    x = g["x"]
    h = x @ p["w1"] + p["b1"]
    h = jnp.where(h > 0, h, p["a1"][0, 0] * h)
    h = h @ p["w2"] + p["b2"]
    h2 = h @ p["w3"] + p["b3"]
    mean = h2.mean(-1, keepdims=True)
    var = ((h2 - mean) ** 2).mean(-1, keepdims=True)
    h2 = (h2 - mean) / jnp.sqrt(var + LN_EPS) * p["ln_w"] + p["ln_b"]
    h2 = jnp.where(h2 > 0, h2, p["a2"][0, 0] * h2)
    dos = h2 @ p["w4"] + p["b4"]
    return jax.ops.segment_sum(dos, g["batch"], num_segments=num_graphs)


def reference_edge(g, p):
    ev = g["edge_vec"]
    length = jnp.sqrt(jnp.sum(ev * ev, axis=1, keepdims=True))
    u = 2.0 * (length / 4.0 - 1.0)
    y = 0.5 * (1.0 - jnp.cos(jnp.pi * u))
    y = jnp.where(u > 0.0, 0.0, y)
    y = jnp.where(u < -1.0, 1.0, y)
    ea = y * g["edge_shift"]
    h = ea @ p["we1"] + p["be1"]
    h = jnp.where(h > 0, h, p["ae1"][0, 0] * h)
    return h @ p["we2"] + p["be2"]


if __name__ == "__main__":
    # Small synthetic graph batch: 2 graphs, 16 nodes, 12 edges.
    N, E, B = 16, 12, 2
    n_atom_feats, n_bond_feats, n_hidden = 16, 3, 32

    key = jax.random.PRNGKey(0)
    kx, kev, kes, kp = jax.random.split(key, 4)
    g = {
        "x": jax.random.normal(kx, (N, n_atom_feats), jnp.float32),
        "edge_vec": 3.0 * jax.random.normal(kev, (E, 3), jnp.float32),
        "edge_shift": jax.random.normal(kes, (E, n_bond_feats), jnp.float32),
        "batch": jnp.array([0] * 9 + [1] * 7, jnp.int32),
    }
    params = init_params(kp, n_atom_feats, n_bond_feats, n_hidden)

    out = mlp2_phonon_forward(g, params, B)
    out = jax.block_until_ready(out)

    ref = reference_forward(g, params, B)
    assert out.shape == (B, DIM_OUT)
    np.testing.assert_allclose(np.asarray(out), np.asarray(ref), rtol=1e-4, atol=1e-4)

    # Exercise the (otherwise dead) tiled edge kernel once as well.
    edge_out = jax.block_until_ready(edge_encoder_forward(g["edge_vec"], g["edge_shift"], params))
    edge_ref = reference_edge(g, params)
    np.testing.assert_allclose(np.asarray(edge_out), np.asarray(edge_ref), rtol=1e-4, atol=1e-4)

    print("KERNEL_OK")
</pallas_src>

<mosaic_0001>
module attributes {stable_mosaic.version = 11 : i64} {
  func.func @node_path_kernel(%arg0: i32, %arg1: i32, %arg2: memref<8x16xf32, #tpu.memory_space<vmem>>, %arg3: memref<8x1xi32, #tpu.memory_space<vmem>>, %arg4: memref<16x32xf32, #tpu.memory_space<vmem>>, %arg5: memref<1x32xf32, #tpu.memory_space<vmem>>, %arg6: memref<32x32xf32, #tpu.memory_space<vmem>>, %arg7: memref<1x32xf32, #tpu.memory_space<vmem>>, %arg8: memref<32x32xf32, #tpu.memory_space<vmem>>, %arg9: memref<1x32xf32, #tpu.memory_space<vmem>>, %arg10: memref<1x32xf32, #tpu.memory_space<vmem>>, %arg11: memref<1x32xf32, #tpu.memory_space<vmem>>, %arg12: memref<32x128xf32, #tpu.memory_space<vmem>>, %arg13: memref<1x128xf32, #tpu.memory_space<vmem>>, %arg14: memref<1x1xf32, #tpu.memory_space<smem>>, %arg15: memref<1x1xf32, #tpu.memory_space<smem>>, %arg16: memref<1x2x128xf32, #tpu.memory_space<vmem>>) attributes {dimension_semantics = [#tpu.dimension_semantics<parallel>, #tpu.dimension_semantics<arbitrary>], iteration_bounds = array<i64: 2, 1>, scalar_prefetch = 0 : i64, scratch_operands = 0 : i64, tpu.core_type = #tpu.core_type<tc>, window_params = [{transform_indices = @transform_0, window_bounds = array<i64: 8, 16>}, {transform_indices = @transform_1, window_bounds = array<i64: 8, 1>}, {pipeline_mode = #tpu.pipeline_mode<synchronous>, transform_indices = @transform_2, window_bounds = array<i64: 16, 32>}, {pipeline_mode = #tpu.pipeline_mode<synchronous>, transform_indices = @transform_3, window_bounds = array<i64: 1, 32>}, {pipeline_mode = #tpu.pipeline_mode<synchronous>, transform_indices = @transform_4, window_bounds = array<i64: 32, 32>}, {pipeline_mode = #tpu.pipeline_mode<synchronous>, transform_indices = @transform_5, window_bounds = array<i64: 1, 32>}, {pipeline_mode = #tpu.pipeline_mode<synchronous>, transform_indices = @transform_6, window_bounds = array<i64: 32, 32>}, {pipeline_mode = #tpu.pipeline_mode<synchronous>, transform_indices = @transform_7, window_bounds = array<i64: 1, 32>}, {pipeline_mode = #tpu.pipeline_mode<synchronous>, transform_indices = @transform_8, window_bounds = array<i64: 1, 32>}, {pipeline_mode = #tpu.pipeline_mode<synchronous>, transform_indices = @transform_9, window_bounds = array<i64: 1, 32>}, {pipeline_mode = #tpu.pipeline_mode<synchronous>, transform_indices = @transform_10, window_bounds = array<i64: 32, 128>}, {pipeline_mode = #tpu.pipeline_mode<synchronous>, transform_indices = @transform_11, window_bounds = array<i64: 1, 128>}, {transform_indices = @transform_12, window_bounds = array<i64: 1, 1>}, {transform_indices = @transform_13, window_bounds = array<i64: 1, 1>}, {transform_indices = @transform_14, window_bounds = array<i64: 1, 2, 128>}]} {
    %c0_i32 = arith.constant 0 : i32
    %0 = arith.cmpi eq, %arg1, %c0_i32 : i32
    %1 = arith.extui %0 : i1 to i32
    %c0_i32_0 = arith.constant 0 : i32
    %2 = arith.cmpi ne, %1, %c0_i32_0 : i32
    scf.if %2 {
      %cst_45 = arith.constant 0.000000e+00 : f32
      %73 = vector.broadcast %cst_45 : f32 to vector<2x128xf32>
      %c0_46 = arith.constant 0 : index
      %c0_47 = arith.constant 0 : index
      %c0_48 = arith.constant 0 : index
      %74 = vector.load %arg16[%c0_46, %c0_47, %c0_48] : memref<1x2x128xf32, #tpu.memory_space<vmem>>, vector<1x2x128xf32>
      %75 = vector.shape_cast %74 : vector<1x2x128xf32> to vector<2x128xf32>
      %76 = vector.shape_cast %73 : vector<2x128xf32> to vector<1x2x128xf32>
      tpu.vector_store %arg16[%c0_46, %c0_47, %c0_48], %76 {strides = array<i32>} : memref<1x2x128xf32, #tpu.memory_space<vmem>>, vector<1x2x128xf32>,
    } else {
    }
    %c0 = arith.constant 0 : index
    %c0_1 = arith.constant 0 : index
    %3 = vector.load %arg2[%c0, %c0_1] : memref<8x16xf32, #tpu.memory_space<vmem>>, vector<8x16xf32>
    %c0_2 = arith.constant 0 : index
    %c0_3 = arith.constant 0 : index
    %4 = vector.load %arg4[%c0_2, %c0_3] : memref<16x32xf32, #tpu.memory_space<vmem>>, vector<16x32xf32>
    %cst = arith.constant dense<0.000000e+00> : vector<8x32xf32>
    %5 = tpu.matmul %3, %4, %cst {dimension_numbers = #tpu.dot_dimension_numbers<[1], [0], [0], [1], [0, 0, 1, 1], [], []>} : vector<8x16xf32>, vector<16x32xf32>, vector<8x32xf32> -> vector<8x32xf32>
    %c0_4 = arith.constant 0 : index
    %c0_5 = arith.constant 0 : index
    %6 = vector.load %arg5[%c0_4, %c0_5] : memref<1x32xf32, #tpu.memory_space<vmem>>, vector<1x32xf32>
    %7 = vector.broadcast %6 : vector<1x32xf32> to vector<8x32xf32>
    %8 = arith.addf %5, %7 : vector<8x32xf32>
    %c0_6 = arith.constant 0 : index
    %c0_7 = arith.constant 0 : index
    %9 = memref.load %arg14[%c0_6, %c0_7] : memref<1x1xf32, #tpu.memory_space<smem>>
    %cst_8 = arith.constant 0.000000e+00 : f32
    %10 = vector.broadcast %cst_8 : f32 to vector<8x32xf32>
    %11 = arith.cmpf ogt, %8, %10 : vector<8x32xf32>
    %12 = vector.broadcast %9 : f32 to vector<8x32xf32>
    %13 = arith.mulf %12, %8 : vector<8x32xf32>
    %14 = arith.select %11, %8, %13 : vector<8x32xi1>, vector<8x32xf32>
    %c0_9 = arith.constant 0 : index
    %c0_10 = arith.constant 0 : index
    %15 = vector.load %arg6[%c0_9, %c0_10] : memref<32x32xf32, #tpu.memory_space<vmem>>, vector<32x32xf32>
    %cst_11 = arith.constant dense<0.000000e+00> : vector<8x32xf32>
    %16 = tpu.matmul %14, %15, %cst_11 {dimension_numbers = #tpu.dot_dimension_numbers<[1], [0], [0], [1], [0, 0, 1, 1], [], []>} : vector<8x32xf32>, vector<32x32xf32>, vector<8x32xf32> -> vector<8x32xf32>
    %c0_12 = arith.constant 0 : index
    %c0_13 = arith.constant 0 : index
    %17 = vector.load %arg7[%c0_12, %c0_13] : memref<1x32xf32, #tpu.memory_space<vmem>>, vector<1x32xf32>
    %18 = vector.broadcast %17 : vector<1x32xf32> to vector<8x32xf32>
    %19 = arith.addf %16, %18 : vector<8x32xf32>
    %c0_14 = arith.constant 0 : index
    %c0_15 = arith.constant 0 : index
    %20 = vector.load %arg8[%c0_14, %c0_15] : memref<32x32xf32, #tpu.memory_space<vmem>>, vector<32x32xf32>
    %cst_16 = arith.constant dense<0.000000e+00> : vector<8x32xf32>
    %21 = tpu.matmul %19, %20, %cst_16 {dimension_numbers = #tpu.dot_dimension_numbers<[1], [0], [0], [1], [0, 0, 1, 1], [], []>} : vector<8x32xf32>, vector<32x32xf32>, vector<8x32xf32> -> vector<8x32xf32>
    %c0_17 = arith.constant 0 : index
    %c0_18 = arith.constant 0 : index
    %22 = vector.load %arg9[%c0_17, %c0_18] : memref<1x32xf32, #tpu.memory_space<vmem>>, vector<1x32xf32>
    %23 = vector.broadcast %22 : vector<1x32xf32> to vector<8x32xf32>
    %24 = arith.addf %21, %23 : vector<8x32xf32>
    %cst_19 = arith.constant dense<0.000000e+00> : vector<8xf32>
    %25 = vector.multi_reduction <add>, %24, %cst_19 [1] : vector<8x32xf32> to vector<8xf32>
    %26 = vector.shape_cast %25 : vector<8xf32> to vector<8x1xf32>
    %27 = arith.mulf %24, %24 : vector<8x32xf32>
    %cst_20 = arith.constant dense<0.000000e+00> : vector<8xf32>
    %28 = vector.multi_reduction <add>, %27, %cst_20 [1] : vector<8x32xf32> to vector<8xf32>
    %29 = vector.shape_cast %28 : vector<8xf32> to vector<8x1xf32>
    %cst_21 = arith.constant 3.125000e-02 : f32
    %30 = vector.broadcast %cst_21 : f32 to vector<8x1xf32>
    %31 = arith.mulf %26, %30 : vector<8x1xf32>
    %cst_22 = arith.constant 3.125000e-02 : f32
    %32 = vector.broadcast %cst_22 : f32 to vector<8x1xf32>
    %33 = arith.mulf %29, %32 : vector<8x1xf32>
    %34 = arith.mulf %31, %31 : vector<8x1xf32>
    %35 = arith.subf %33, %34 : vector<8x1xf32>
    %36 = vector.broadcast %31 : vector<8x1xf32> to vector<8x32xf32>
    %37 = arith.subf %24, %36 : vector<8x32xf32>
    %cst_23 = arith.constant 9.99999974E-6 : f32
    %38 = vector.broadcast %cst_23 : f32 to vector<8x1xf32>
    %39 = arith.addf %35, %38 : vector<8x1xf32>
    %40 = math.rsqrt %39 : vector<8x1xf32>
    %41 = vector.broadcast %40 : vector<8x1xf32> to vector<8x32xf32>
    %42 = arith.mulf %37, %41 : vector<8x32xf32>
    %c0_24 = arith.constant 0 : index
    %c0_25 = arith.constant 0 : index
    %43 = vector.load %arg10[%c0_24, %c0_25] : memref<1x32xf32, #tpu.memory_space<vmem>>, vector<1x32xf32>
    %44 = vector.broadcast %43 : vector<1x32xf32> to vector<8x32xf32>
    %45 = arith.mulf %42, %44 : vector<8x32xf32>
    %c0_26 = arith.constant 0 : index
    %c0_27 = arith.constant 0 : index
    %46 = vector.load %arg11[%c0_26, %c0_27] : memref<1x32xf32, #tpu.memory_space<vmem>>, vector<1x32xf32>
    %47 = vector.broadcast %46 : vector<1x32xf32> to vector<8x32xf32>
    %48 = arith.addf %45, %47 : vector<8x32xf32>
    %c0_28 = arith.constant 0 : index
    %c0_29 = arith.constant 0 : index
    %49 = memref.load %arg15[%c0_28, %c0_29] : memref<1x1xf32, #tpu.memory_space<smem>>
    %cst_30 = arith.constant 0.000000e+00 : f32
    %50 = vector.broadcast %cst_30 : f32 to vector<8x32xf32>
    %51 = arith.cmpf ogt, %48, %50 : vector<8x32xf32>
    %52 = vector.broadcast %49 : f32 to vector<8x32xf32>
    %53 = arith.mulf %52, %48 : vector<8x32xf32>
    %54 = arith.select %51, %48, %53 : vector<8x32xi1>, vector<8x32xf32>
    %c0_31 = arith.constant 0 : index
    %c0_32 = arith.constant 0 : index
    %55 = vector.load %arg12[%c0_31, %c0_32] : memref<32x128xf32, #tpu.memory_space<vmem>>, vector<32x128xf32>
    %cst_33 = arith.constant dense<0.000000e+00> : vector<8x128xf32>
    %56 = tpu.matmul %54, %55, %cst_33 {dimension_numbers = #tpu.dot_dimension_numbers<[1], [0], [0], [1], [0, 0, 1, 1], [], []>} : vector<8x32xf32>, vector<32x128xf32>, vector<8x128xf32> -> vector<8x128xf32>
    %c0_34 = arith.constant 0 : index
    %c0_35 = arith.constant 0 : index
    %57 = vector.load %arg13[%c0_34, %c0_35] : memref<1x128xf32, #tpu.memory_space<vmem>>, vector<1x128xf32>
    %58 = vector.broadcast %57 : vector<1x128xf32> to vector<8x128xf32>
    %59 = arith.addf %56, %58 : vector<8x128xf32>
    %c0_36 = arith.constant 0 : index
    %c0_37 = arith.constant 0 : index
    %60 = vector.load %arg3[%c0_36, %c0_37] : memref<8x1xi32, #tpu.memory_space<vmem>>, vector<8x1xi32>
    %61 = tpu.iota {dimensions = array<i32: 1>} : vector<8x2xi32>
    %62 = vector.broadcast %60 : vector<8x1xi32> to vector<8x2xi32>
    %63 = arith.cmpi eq, %62, %61 : vector<8x2xi32>
    %64 = arith.extui %63 : vector<8x2xi1> to vector<8x2xi32>
    %65 = arith.sitofp %64 : vector<8x2xi32> to vector<8x2xf32>
    %c0_38 = arith.constant 0 : index
    %c0_39 = arith.constant 0 : index
    %c0_40 = arith.constant 0 : index
    %66 = vector.load %arg16[%c0_38, %c0_39, %c0_40] : memref<1x2x128xf32, #tpu.memory_space<vmem>>, vector<1x2x128xf32>
    %67 = vector.shape_cast %66 : vector<1x2x128xf32> to vector<2x128xf32>
    %cst_41 = arith.constant dense<0.000000e+00> : vector<2x128xf32>
    %68 = tpu.matmul %65, %59, %cst_41 {dimension_numbers = #tpu.dot_dimension_numbers<[0], [0], [1], [1], [0, 1, 1, 1], [], []>} : vector<8x2xf32>, vector<8x128xf32>, vector<2x128xf32> -> vector<2x128xf32>
    %69 = arith.addf %67, %68 : vector<2x128xf32>
    %c0_42 = arith.constant 0 : index
    %c0_43 = arith.constant 0 : index
    %c0_44 = arith.constant 0 : index
    %70 = vector.load %arg16[%c0_42, %c0_43, %c0_44] : memref<1x2x128xf32, #tpu.memory_space<vmem>>, vector<1x2x128xf32>
    %71 = vector.shape_cast %70 : vector<1x2x128xf32> to vector<2x128xf32>
    %72 = vector.shape_cast %69 : vector<2x128xf32> to vector<1x2x128xf32>
    tpu.vector_store %arg16[%c0_42, %c0_43, %c0_44], %72 {strides = array<i32>} : memref<1x2x128xf32, #tpu.memory_space<vmem>>, vector<1x2x128xf32>,
    return
  }
  func.func @transform_0(%arg0: i32, %arg1: i32) -> (i32, i32) {
    %c1_i32 = arith.constant 1 : i32
    %0 = arith.muli %arg0, %c1_i32 : i32
    %1 = arith.addi %0, %arg1 : i32
    %c0_i32 = arith.constant 0 : i32
    %c0_i32_0 = arith.constant 0 : i32
    return %1, %c0_i32 : i32, i32
  }
  func.func @transform_1(%arg0: i32, %arg1: i32) -> (i32, i32) {
    %c1_i32 = arith.constant 1 : i32
    %0 = arith.muli %arg0, %c1_i32 : i32
    %1 = arith.addi %0, %arg1 : i32
    %c0_i32 = arith.constant 0 : i32
    %c0_i32_0 = arith.constant 0 : i32
    return %1, %c0_i32 : i32, i32
  }
  func.func @transform_2(%arg0: i32, %arg1: i32) -> (i32, i32) {
    %c0_i32 = arith.constant 0 : i32
    %c0_i32_0 = arith.constant 0 : i32
    %c0_i32_1 = arith.constant 0 : i32
    return %c0_i32, %c0_i32_0 : i32, i32
  }
  func.func @transform_3(%arg0: i32, %arg1: i32) -> (i32, i32) {
    %c0_i32 = arith.constant 0 : i32
    %c0_i32_0 = arith.constant 0 : i32
    %c0_i32_1 = arith.constant 0 : i32
    return %c0_i32, %c0_i32_0 : i32, i32
  }
  func.func @transform_4(%arg0: i32, %arg1: i32) -> (i32, i32) {
    %c0_i32 = arith.constant 0 : i32
    %c0_i32_0 = arith.constant 0 : i32
    %c0_i32_1 = arith.constant 0 : i32
    return %c0_i32, %c0_i32_0 : i32, i32
  }
  func.func @transform_5(%arg0: i32, %arg1: i32) -> (i32, i32) {
    %c0_i32 = arith.constant 0 : i32
    %c0_i32_0 = arith.constant 0 : i32
    %c0_i32_1 = arith.constant 0 : i32
    return %c0_i32, %c0_i32_0 : i32, i32
  }
  func.func @transform_6(%arg0: i32, %arg1: i32) -> (i32, i32) {
    %c0_i32 = arith.constant 0 : i32
    %c0_i32_0 = arith.constant 0 : i32
    %c0_i32_1 = arith.constant 0 : i32
    return %c0_i32, %c0_i32_0 : i32, i32
  }
  func.func @transform_7(%arg0: i32, %arg1: i32) -> (i32, i32) {
    %c0_i32 = arith.constant 0 : i32
    %c0_i32_0 = arith.constant 0 : i32
    %c0_i32_1 = arith.constant 0 : i32
    return %c0_i32, %c0_i32_0 : i32, i32
  }
  func.func @transform_8(%arg0: i32, %arg1: i32) -> (i32, i32) {
    %c0_i32 = arith.constant 0 : i32
    %c0_i32_0 = arith.constant 0 : i32
    %c0_i32_1 = arith.constant 0 : i32
    return %c0_i32, %c0_i32_0 : i32, i32
  }
  func.func @transform_9(%arg0: i32, %arg1: i32) -> (i32, i32) {
    %c0_i32 = arith.constant 0 : i32
    %c0_i32_0 = arith.constant 0 : i32
    %c0_i32_1 = arith.constant 0 : i32
    return %c0_i32, %c0_i32_0 : i32, i32
  }
  func.func @transform_10(%arg0: i32, %arg1: i32) -> (i32, i32) {
    %c0_i32 = arith.constant 0 : i32
    %c0_i32_0 = arith.constant 0 : i32
    %c0_i32_1 = arith.constant 0 : i32
    return %c0_i32, %c0_i32_0 : i32, i32
  }
  func.func @transform_11(%arg0: i32, %arg1: i32) -> (i32, i32) {
    %c0_i32 = arith.constant 0 : i32
    %c0_i32_0 = arith.constant 0 : i32
    %c0_i32_1 = arith.constant 0 : i32
    return %c0_i32, %c0_i32_0 : i32, i32
  }
  func.func @transform_12(%arg0: i32, %arg1: i32) -> (i32, i32) {
    %c0_i32 = arith.constant 0 : i32
    %c0_i32_0 = arith.constant 0 : i32
    %c0_i32_1 = arith.constant 0 : i32
    return %c0_i32, %c0_i32_0 : i32, i32
  }
  func.func @transform_13(%arg0: i32, %arg1: i32) -> (i32, i32) {
    %c0_i32 = arith.constant 0 : i32
    %c0_i32_0 = arith.constant 0 : i32
    %c0_i32_1 = arith.constant 0 : i32
    return %c0_i32, %c0_i32_0 : i32, i32
  }
  func.func @transform_14(%arg0: i32, %arg1: i32) -> (i32, i32, i32) {
    %c0_i32 = arith.constant 0 : i32
    %c0_i32_0 = arith.constant 0 : i32
    %c0_i32_1 = arith.constant 0 : i32
    return %arg0, %c0_i32, %c0_i32_0 : i32, i32, i32
  }
}

</mosaic_0001>

<bundles_post_ra>
// kernel: tpu_custom_call.1
= control target key start
LH: loop header
LB: loop body
LE: loop exit
PB: predicated region body
PF: predicated region fallthrough
CT: control target
= control target key end

     0   :  { %s2068_s0 = inlined_call_operand.hbm [shape: f32[16,16], index: 0, kind: input, shape index: {}]   ;;  %s2069_s1 = inlined_call_operand.vmem [shape: s32[16,1], index: 1, kind: input, shape index: {}]   ;;  %s2070_s2 = inlined_call_operand.hbm [shape: f32[16,32], index: 2, kind: input, shape index: {}]   ;;  %s2071_s3 = inlined_call_operand.vmem [shape: f32[1,32], index: 3, kind: input, shape index: {}]   ;;  %s2072_s4 = inlined_call_operand.vmem [shape: f32[32,32], index: 4, kind: input, shape index: {}]   ;;  %s2073_s5 = inlined_call_operand.vmem [shape: f32[1,32], index: 5, kind: input, shape index: {}]   ;;  %s2074_s6 = inlined_call_operand.hbm [shape: f32[32,32], index: 6, kind: input, shape index: {}]   ;;  %s2075_s7 = inlined_call_operand.vmem [shape: f32[1,32], index: 7, kind: input, shape index: {}]   ;;  %s2076_s8 = inlined_call_operand.vmem [shape: f32[1,32], index: 8, kind: input, shape index: {}]   ;;  %s2077_s9 = inlined_call_operand.vmem [shape: f32[1,32], index: 9, kind: input, shape index: {}]   ;;  %s2078_s10 = inlined_call_operand.hbm [shape: f32[32,128], index: 10, kind: input, shape index: {}]   ;;  %s2079_s11 = inlined_call_operand.vmem [shape: f32[1,128], index: 11, kind: input, shape index: {}]   ;;  %s2080_s12 = inlined_call_operand.<no memory space> [shape: f32[1,1], index: 12, kind: input, shape index: {}]   ;;  %s2081_s13 = inlined_call_operand.<no memory space> [shape: f32[1,1], index: 13, kind: input, shape index: {}]   ;;  %s2082_s14 = inlined_call_operand.hbm [shape: f32[2,2,128], index: 14, kind: output, shape index: {}]  }
   0x1   :  { %2090 = sst [smem:[#allocation19_spill]] %s2069_s1 }
   0x2   :  { %2091 = sst [smem:[#allocation20_spill]] %s2073_s5 }
   0x3   :  { %2092 = sst [smem:[#allocation21_spill]] %s2075_s7 }
   0x4   :  { %2093 = sst [smem:[#allocation22_spill]] %s2076_s8 }
   0x5   :  { %2094 = sst [smem:[#allocation23_spill]] %s2077_s9 }
   0x6   :  { %2095 = sst [smem:[#allocation24_spill]] %s2079_s11 }
   0x7   :  { %2096 = sst [smem:[#allocation25_spill]] %s2082_s14 }
   0x8   :  { %19 = sst [smem:[#allocation2]] %s2080_s12 }
   0x9   :  { %20 = sst [smem:[#allocation3]] %s2081_s13 }
   0xa   :  { %21 = vsyncpa [#allocation5], 0 }
   0xb   :  { %23 = vsyncpa [#allocation5 + $0x1], 0 }
   0xc   :  { %24 = vsyncpa [#allocation8], 0 }
   0xd   :  { %25 = vsyncpa [#allocation11], 0 }
   0xe   :  { %26 = vsyncpa [#allocation6], 0 }
   0xf   :  { %28 = vsyncpa [#allocation6 + $0x1], 0  ;;  %s1723_s17 = smov 0   ;;  %s1725_s18 = smov 0  }
  0x10   :  { %s1727_s19 = smov 0   ;;  %s1729_s20 = smov 0  }
  0x11   :  { %s1731_s21 = smov 0   ;;  %s1733_s12 = smov 0  }
  0x12 LB: > { %2097 = sst [smem:[#allocation17_spill]] %s1609_s17  ;;  %s1204_s13 = sadd.s32 4294967295, %s1629_s12   ;;  %s1629_s12 = sphi %s1733_s12, %s34_s12   ;;  %s1625_s21 = sphi %s1731_s21, %s2128_s21   ;;  %s1621_s20 = sphi %s1729_s20, %s2127_s20   ;;  %s1617_s19 = sphi %s1727_s19, %s2126_s19   ;;  %s1613_s18 = sphi %s1725_s18, %s2125_s18   ;;  %s1609_s17 = sphi %s1723_s17, %s2124_s17  }
  0x13   : > { %s1205_s22 = sadd.s32 4294967294, %s1629_s12   ;;  %p68_p0 = scmp.ne.s32.totalorder %s1613_s18, %s1609_s17 }
  0x14   : > { %p1757_p1 = scmp.eq.s32.totalorder %s1204_s13, 0  ;;  %p1761_p2 = scmp.eq.s32.totalorder %s1204_s13, 1 }
  0x15   : > { %p378_p3 = scmp.eq.s32.totalorder %s1205_s22, 1  ;;  %p1206_p5 = scmp.ge.s32.totalorder %s1629_s12, 1 }
  0x16   : > { %s2098_s23 = scalar_select %p1757_p1, 1, 0 }
  0x17   : > { %s2099_s24 = scalar_select %p1761_p2, 1, 0 }
  0x18   : > { %p1767_p4 = por %p1757_p1, %p68_p0  ;;  %p1772_p6 = por %p378_p3, %p68_p0 }
  0x19   : > { %p385_p7 = scmp.lt.s32.totalorder %s1629_s12, 3  ;;  %s1631_s28 = smov [#allocation7]  }
  0x1a   : > { %s2100_s25 = scalar_select %p1767_p4, 1, 0 }
  0x1b   : > { %s2101_s26 = scalar_select %p1772_p6, 1, 0 }
  0x1c   : > { %p1777_p8 = pnand %p1206_p5, %p385_p7  ;;  %s397_s29 = sshll.u32 %s1631_s28, 4  ;;  %s1781_s29 = int_to_ptr.vmem [resolvable:$true] %s397_s29 }
  0x1d   : > { %2102 = sst [smem:[#allocation18_spill]] %s2101_s26  ;;  %s1632_s15 = smov [#allocation9]  }
  0x1e   : > { %s2103_s27 = scalar_select %p1777_p8, 1, 0 }
  0x1f   : > { %p1338_p9 = pneg %p1777_p8  ;;  %s419_s16 = sshll.u32 %s1632_s15, 4  ;;  %s1792_s16 = int_to_ptr.vmem [resolvable:$true] %s419_s16 }
  0x20   : > { %s1633_s13 = smov [#allocation10]   ;;  %s1425_s17 = scalar_lea.hbm %s2070_s2, 256 }
  0x21   : > { %p1788_p11 = pnand %p1338_p9, %p1757_p1  ;;  %s1794_s22 = sshll.u32 %s1633_s13, 4  ;;  %s442_s22 = int_to_ptr.vmem [resolvable:$true] %s1794_s22 }
  0x22   : > { %p1426_p12 = scmp.ne.s32.totalorder %s2070_s2, %s1425_s17  ;;  %p1432_p5 = scmp.lt.u32.totalorder %s1425_s17, %s2070_s2 }
  0x23   : > { %p1804_p13 = pneg %p1788_p11 }
  0x25   : > { %p1428_p0 = pnand %p1804_p13, %p1426_p12 }
  0x27   : > { %p1429_p3 = pneg %p1428_p0 }
  0x29   : > { %p1434_p7 = pnand %p1432_p5, %p1429_p3 }
  0x2b   : > { %1437 = shalt.err (!%p1434_p7)
}
  0x2c   : > { %s1438_s11 = scalar_lea.vmem %s1781_s29, 256  ;;  %p1446_p1 = scmp.lt.s32.totalorder %s1781_s29, %s1781_s29 }
  0x2d   : > { %p1439_p9 = scmp.ne.s32.totalorder %s1781_s29, %s1438_s11  ;;  %p1447_p4 = scmp.lt.s32.totalorder %s1438_s11, %s1438_s11 }
  0x2f   : > { %p1441_p10 = pnand %p1439_p9, %p1804_p13  ;;  %p1448_p12 = por %p1447_p4, %p1446_p1 }
  0x31   : > { %p1442_p6 = pneg %p1441_p10 }
  0x33   : > { %p1449_p0 = pnand %p1448_p12, %p1442_p6 }
  0x35   : > { %1452 = shalt.err (!%p1449_p0)
}
  0x36   : > { %s1634_s14 = smov 128   ;;  %s1635_s17 = smov 8  }
  0x37   : > { %1341 = dma.hbm_to_vmem [thread:$0]  (!%p1788_p11), %s2070_s2, 256, %s1781_s29, [#allocation8], %s1634_s14, %s1634_s14, %s1635_s17  }
  0x38   : > { %s1453_s11 = scalar_lea.hbm %s2074_s6, 512 }
  0x39   : > { %p1454_p1 = scmp.ne.s32.totalorder %s2074_s6, %s1453_s11  ;;  %p1460_p10 = scmp.lt.u32.totalorder %s1453_s11, %s2074_s6 }
  0x3b   : > { %p1456_p4 = pnand %p1454_p1, %p1804_p13 }
  0x3d   : > { %p1457_p6 = pneg %p1456_p4 }
  0x3f   : > { %p1462_p3 = pnand %p1460_p10, %p1457_p6 }
  0x41   : > { %1465 = shalt.err (!%p1462_p3)
}
  0x42   : > { %s1466_s29 = scalar_lea.vmem %s1792_s16, 512  ;;  %p1474_p12 = scmp.lt.s32.totalorder %s1792_s16, %s1792_s16 }
  0x43   : > { %p1467_p5 = scmp.ne.s32.totalorder %s1792_s16, %s1466_s29  ;;  %p1475_p0 = scmp.lt.s32.totalorder %s1466_s29, %s1466_s29 }
  0x45   : > { %p1469_p7 = pnand %p1467_p5, %p1804_p13  ;;  %p1476_p1 = por %p1475_p0, %p1474_p12 }
  0x47   : > { %p1470_p9 = pneg %p1469_p7 }
  0x49   : > { %p1477_p4 = pnand %p1476_p1, %p1470_p9 }
  0x4b   : > { %1480 = shalt.err (!%p1477_p4)
}
  0x4c   : > { %1344 = dma.hbm_to_vmem [thread:$0]  (!%p1788_p11), %s2074_s6, 512, %s1792_s16, [#allocation8], %s1634_s14, %s1634_s14, %s1635_s17  }
  0x4d   : > { %s1481_s26 = scalar_lea.hbm %s2078_s10, 512 }
  0x4e   : > { %p1482_p6 = scmp.ne.s32.totalorder %s2078_s10, %s1481_s26  ;;  %p1488_p5 = scmp.lt.u32.totalorder %s1481_s26, %s2078_s10 }
  0x50   : > { %p1484_p10 = pnand %p1482_p6, %p1804_p13 }
  0x52   : > { %p1485_p3 = pneg %p1484_p10 }
  0x54   : > { %p1490_p7 = pnand %p1488_p5, %p1485_p3 }
  0x56   : > { %1493 = shalt.err (!%p1490_p7)
}
  0x57   : > { %s1494_s29 = scalar_lea.vmem %s442_s22, 512  ;;  %p1502_p1 = scmp.lt.s32.totalorder %s442_s22, %s442_s22 }
  0x58   : > { %p1495_p9 = scmp.ne.s32.totalorder %s442_s22, %s1494_s29  ;;  %p1503_p4 = scmp.lt.s32.totalorder %s1494_s29, %s1494_s29 }
  0x5a   : > { %p1497_p12 = pnand %p1495_p9, %p1804_p13  ;;  %p1504_p8 = por %p1503_p4, %p1502_p1 }
  0x5c   : > { %p1498_p0 = pneg %p1497_p12 }
  0x5e   : > { %p1505_p2 = pnand %p1504_p8, %p1498_p0 }
  0x60   : > { %1508 = shalt.err (!%p1505_p2)
}
  0x61   : > { %1347 = dma.hbm_to_vmem [thread:$0]  (!%p1788_p11), %s2078_s10, 512, %s442_s22, [#allocation11], %s1634_s14, %s1634_s14, %s1635_s17  }
  0x62   : > { %s55_s9 = sadd.s32 1, %s1617_s19  ;;  %s46_s30 = sadd.s32 1, %s1625_s21 }
  0x63   : > { %p62_p2 = scmp.ne.s32.totalorder %s1617_s19, %s1613_s18  ;;  %p48_p8 = scmp.ge.s32.totalorder %s46_s30, 2 }
  0x64   : > { %p63_p13 = scmp.eq.s32.totalorder %s1629_s12, 0  ;;  %p2106_p6 = scmp.ne.s32.totalorder %s2099_s24, 0 }
  0x65   : > { %p1359_p3 = scmp.lt.s32.totalorder %s1629_s12, 2  ;;  %s2130_s30 = smov (%p48_p8, %s46_s30), 0 }
  0x66   : > { %p1883_p10 = por %p2106_p6, %p62_p2  ;;  %p64_p5 = por %p63_p13, %p62_p2 }
  0x67   : > { %s464_s7 = sand.u32 1, %s1617_s19   ;;  %s52_s8 = ssub.s32 %s1625_s21, %s2130_s30 }
  0x68   : > { %p53_p7 = scmp.eq.s32.totalorder %s52_s8, 0  ;;  %s1211_s22 = sshll.u32 %s464_s7, 3 }
  0x69   : > { %s1212_s14 = sshll.u32 %s1625_s21, 7  ;;  %s468_s15 = scalar_lea.vmem [#allocation4], %s1211_s22 }
  0x6a   : > { %s1895_s17 = scalar_select %p53_p7, %s1617_s19, %s55_s9  }
  0x6b   : > { %s1900_s24 = scalar_lea.hbm %s2068_s0, %s1212_s14  ;;  %s476_s13 = sshll.u32 %s468_s15, 4  ;;  %s1902_s13 = int_to_ptr.vmem [resolvable:$true] %s476_s13 }
  0x6c   : > { %p1906_p11 = pnand %p1359_p3, %p64_p5  ;;  %s465_s29 = scalar_lea.sflag [#allocation5], %s464_s7 }
  0x6d   : > { %s1509_s16 = scalar_lea.hbm %s1900_s24, 128  ;;  %s1514_s8 = scalar_lea.hbm %s2068_s0, 256 }
  0x6e   : > { %p1510_p9 = scmp.ne.s32.totalorder %s1900_s24, %s1509_s16  ;;  %p1511_p12 = pneg %p1906_p11 }
  0x6f   : > { %p1515_p4 = scmp.lt.u32.totalorder %s1900_s24, %s2068_s0  ;;  %p1516_p2 = scmp.lt.u32.totalorder %s1514_s8, %s1509_s16 }
  0x70   : > { %p1512_p0 = pnand %p1511_p12, %p1510_p9  ;;  %p1518_p13 = scmp.lt.u32.totalorder %s1509_s16, %s1900_s24 }
  0x71   : > { %p1517_p8 = por %p1516_p2, %p1515_p4 }
  0x72   : > { %p1513_p1 = pneg %p1512_p0 }
  0x73   : > { %p1519_p6 = por %p1518_p13, %p1517_p8 }
  0x75   : > { %p1520_p3 = pnand %p1519_p6, %p1513_p1 }
  0x77   : > { %1523 = shalt.err (!%p1520_p3)
}
  0x78   : > { %s1524_s7 = scalar_lea.vmem %s1902_s13, 128  ;;  %s1636_s26 = smov [#allocation4]  }
  0x79   : > { %p1525_p5 = scmp.ne.s32.totalorder %s1902_s13, %s1524_s7  ;;  %s1529_s28 = sshll.u32 %s1636_s26, 4  ;;  %s1530_s28 = int_to_ptr.vmem [resolvable:$false] %s1529_s28 }
  0x7a   : > { %s1531_s15 = scalar_lea.vmem %s1530_s28, 256  ;;  %p1532_p0 = scmp.lt.s32.totalorder %s1902_s13, %s1530_s28 }
  0x7b   : > { %p1527_p7 = pnand %p1525_p5, %p1511_p12  ;;  %p1533_p4 = scmp.lt.s32.totalorder %s1531_s15, %s1524_s7 }
  0x7d   : > { %p1528_p9 = pneg %p1527_p7  ;;  %p1534_p2 = por %p1533_p4, %p1532_p0 }
  0x7f   : > { %p1535_p8 = pnand %p1534_p2, %p1528_p9 }
  0x81   : > { %1538 = shalt.err (!%p1535_p8)
}
  0x82   : > { %1351 = dma.hbm_to_vmem [thread:$0]  (!%p1906_p11), %s1900_s24, 128, %s1902_s13, %s465_s29  }
  0x83   : > { %p2109_p1 = scmp.ne.s32.totalorder %s2103_s27, 0 }
  0x84   : > { %s1938_s16 = sand.u32 (!%p2109_p1), 1, %s1613_s18   ;;  %p2110_p12 = scmp.ne.s32.totalorder (!%p2109_p1), %s2100_s25, 0 }
  0x85   : > { %494 = sbr.rel (%p2109_p1) target bundleno = 1414 (0x586), region = 76  ;;  %s1214_s1 = sshll.u32 (!%p2109_p1), %s1938_s16, 3 }
  0x86   : > { %s497_s9 = scalar_lea.sflag (!%p2109_p1), [#allocation5], %s1938_s16  ;;  %s500_s8 = scalar_lea.vmem (!%p2109_p1), [#allocation4], %s1214_s1 }
  0x8c   : > { %1592 = dma.done.wait (%p2110_p12), %s497_s9, 128  }
  0x8d   : > { %1594 = vsyncadd (%p2110_p12), %s497_s9, 4294967168  ;;  %p2111_p13 = scmp.ne.s32.totalorder %s2098_s23, 0 }
  0x8f   : > { %1596 = dma.done.wait (%p2111_p13), [#allocation8], 768  }
  0x90   : > { %1598 = vsyncadd (%p2111_p13), [#allocation8], 4294966528 }
  0x91   : > { %1600 = dma.done.wait (%p2111_p13), [#allocation11], 512  }
  0x92   : > { %1602 = vsyncadd (%p2111_p13), [#allocation11], 4294966784  ;;  %v1637_v0 = vmov 0.0|0.0   ;;  %vm1638_vm0 = vmmov 0   ;;  %v1639_v1 = vmov 0.0   ;;  %v575_v2 = vld [vmem:[#allocation7] sm:$0xff]  ;;  %v953_v44 = vlaneseq }
  0x93   : > { %1301 = vmatprep.subr.bf16.mxu0 %v1637_v0  ;;  %1260 = vmatprep.mubr.msk.f32.mxu0 %vm1638_vm0, %v1639_v1  ;;  %v576_v3 = vld [vmem:[#allocation7 + $0x8] sm:$0xff]  ;;  %v663_v5 = vld [vmem:[%s2072_s4] sm:$0xff]  ;;  %v664_v6 = vld [vmem:[%s2072_s4 + $0x8] sm:$0xff]  ;;  %vm584_vm1 = vcmask 130048   ;;  %s658_s14 = sld [smem:[#allocation2]]  ;;  %vm674_vm3 = vcmask 261120  }
  0x94   : > { %1304 = vmatprep.subr.bf16.mxu1 %v1637_v0  ;;  %1271 = vmatprep.mubr.msk.f32.mxu1 %vm1638_vm0, %v1639_v1  ;;  %v1302_v4 = vpack.c.bf16 %v576_v3, %v575_v2  ;;  %v1305_v7 = vpack.c.bf16 %v664_v6, %v663_v5  ;;  %v574_v8 = vld [vmem:[%s500_s8] sm:$0xff]  ;;  %v665_v9 = vld [vmem:[%s2072_s4 + $0x10] sm:$0xff]  ;;  %v666_v10 = vld [vmem:[%s2072_s4 + $0x18] sm:$0xff]  ;;  %s2112_s1 = sld [smem:[#allocation20_spill]]  ;;  %p564_p11 = scmp.lt.s32.totalorder %s1621_s20, 1  ;;  %v1640_v29 = vmov 0  }
  0x95   : > { %v1308_v11 = vpack.c.bf16 %v666_v10, %v665_v9  ;;  %v748_v12 = vld [vmem:[#allocation9] sm:$0xff]  ;;  %v749_v13 = vld [vmem:[#allocation9 + $0x8] sm:$0xff]  ;;  %v750_v22 = vld [vmem:[#allocation9 + $0x10] sm:$0xff]  ;;  %1421 = vset.pattern.permute.xlu1 %v1640_v29  ;;  %1422 = vset.pattern.permute.xlu0 %v1640_v29  ;;  %s2113_s23 = sld [smem:[#allocation19_spill]]  ;;  %s2114_s29 = sld [smem:[#allocation21_spill]]  ;;  %v954_v46 = vand.u32 127, %v953_v44 }
  0x96   : > { %1303 = vmatpush3.bf16.msra.mxu0 %v1302_v4  ;;  %1306 = vmatpush3.bf16.msra.mxu1 %v1305_v7  ;;  %v1311_v14 = vpack.c.bf16 %v749_v13, %v748_v12  ;;  %v1220_v15 = vld [vmem:[%s2071_s3] ss:$0 sm:$0xff]  ;;  %v751_v23 = vld [vmem:[#allocation9 + $0x18] sm:$0xff]  ;;  %s565_s9 = scalar_select %p564_p11, %s1621_s20, 1  ;;  %v869_v39 = vld [vmem:[#allocation10 + $0x8] sm:$0xff]  ;;  %vm994_vm6 = vcmask 64512  }
  0x97   : > { %1310 = vmatprep.subr.bf16.mxu0 %v1637_v0  ;;  %1307 = vmatprep.subr.bf16.mxu1 %v1637_v0  ;;  %v1314_v24 = vpack.c.bf16 %v751_v23, %v750_v22  ;;  %v868_v38 = vld [vmem:[#allocation10] sm:$0xff]  ;;  %v870_v41 = vld [vmem:[#allocation10 + $0x10] sm:$0xff]  ;;  %v871_v42 = vld [vmem:[#allocation10 + $0x18] sm:$0xff]  ;;  %s863_s22 = sld [smem:[#allocation3]]  ;;  %s2115_s26 = sld [smem:[#allocation22_spill]] }
  0x98   : > { %s1219_s8 = sshll.u32 %s565_s9, 3  ;;  %v1317_v40 = vpack.c.bf16 %v869_v39, %v868_v38  ;;  %v1320_v43 = vpack.c.bf16 %v871_v42, %v870_v41  ;;  %s1218_s9 = sshll.u32 %s1938_s16, 1 }
  0x99   : > { %1261 = vmatmul.mubr.msk.f32.vlgmr.msra.gmra.mrb[0].mxu0 %vm584_vm1, %v574_v8  ;;  %v660_v17 = vstv %s658_s14  ;;  %s1071_s7 = scalar_lea.sflag [#allocation6], %s1938_s16 }
  0x9a   : > { %1282 = vmatprep.mubr.msk.f32.mxu0 %vm1638_vm0, %v1639_v1  ;;  %1309 = vmatpush3.bf16.msra.mxu1 %v1308_v11  ;;  %v1222_v25 = vld [vmem:[%s2112_s1] ss:$0 sm:$0xff]  ;;  %s2116_s1 = sld [smem:[#allocation23_spill]] }
  0x9b   : > { %1316 = vmatprep.subr.bf16.mxu1 %v1637_v0  ;;  %1312 = vmatpush3.bf16.msra.mxu0 %v1311_v14  ;;  %s567_s24 = scalar_lea.vmem %s2113_s23, %s1219_s8  ;;  %v1224_v31 = vld [vmem:[%s2114_s29] ss:$0 sm:$0xff]  ;;  %s561_s8 = scalar_lea.vmem [#allocation12], %s1218_s9 }
  0x9c   : > { %1313 = vmatprep.subr.bf16.mxu0 %v1637_v0  ;;  %v952_v30 = vld [vmem:[%s567_s24] sm:$0xff]  ;;  %573 = vst [vmem:[%s561_s8] sm:$0x3] %v1639_v1  ;;  %s2117_s23 = sld [smem:[#allocation24_spill]]  ;;  %s1233_s24 = sshll.u32 %s1621_s20, 5 }
  0x9d   : > { %956 = vperm.xlu1 %1421, %v952_v30   ;;  %v1226_v57 = vld [vmem:[%s2115_s26] ss:$0 sm:$0xff]  ;;  %v865_v61 = vstv %s863_s22  ;;  %s1084_s13 = sshll.u32 %s561_s8, 4  ;;  %s2118_s22 = sld [smem:[#allocation25_spill]]  ;;  %s2021_s13 = int_to_ptr.vmem [resolvable:$true] %s1084_s13 }
  0x9e   : > { %s1539_s26 = scalar_lea.vmem %s2021_s13, 32  ;;  %s1641_s20 = smov [#allocation12]  }
  0x9f   : > { %1315 = vmatpush3.bf16.msra.mxu0 %v1314_v24  ;;  %p1540_p6 = scmp.ne.s32.totalorder %s2021_s13, %s1539_s26  ;;  %s1543_s28 = sshll.u32 %s1641_s20, 4  ;;  %s1544_s28 = int_to_ptr.vmem [resolvable:$false] %s1543_s28 }
  0xa0   : > { %1296 = vmatprep.subr.mxu0 %v1639_v1  ;;  %v1227_v59 = vld [vmem:[%s2116_s1] ss:$0 sm:$0xff]  ;;  %s1545_s15 = scalar_lea.vmem %s1544_s28, 64  ;;  %p1546_p7 = scmp.lt.s32.totalorder %s2021_s13, %s1544_s28 }
  0xa1   : > { %p1541_p3 = pnand %p1540_p6, %p1883_p10  ;;  %p1547_p9 = scmp.lt.s32.totalorder %s1545_s15, %s1539_s26 }
  0xa2   : > { %v1228_v2 = vld [vmem:[%s2117_s23] ss:$0 sm:$0xff] }
  0xa3   : > { %v961_v7 = vld [vmem:[%s561_s8] sm:$0x3]  ;;  %s2019_s14 = scalar_lea.hbm %s2118_s22, %s1233_s24  ;;  %p1542_p5 = pneg %p1541_p3 }
  0xa4   : > { %p1548_p0 = por %p1547_p9, %p1546_p7 }
  0xa6   : > { %p1549_p4 = pnand %p1548_p0, %p1542_p5 }
 0x11c   : > { %v957_v45 = vpop.permute.xlu1 %956 }
 0x11d   : > { %vm958_vm4 = vcmp.eq.s32.totalorder %v957_v45, %v954_v46 }
 0x11e   : > { %v1230_v47 = vsel %vm958_vm4, 1.0, %v1639_v1 }
 0x11f   : > { %962 = vxpose.xlu1.b32.start.end [1/1] (short) (narrow) %v1230_v47, 8 }
 0x16c   : > { %v654_v16 = vpop.f32.mrb[0].mxu0 }
 0x16d   : > { %v655_v18 = vadd.f32 %v1220_v15, %v654_v16  ;;  %v1262_v19 = vpop.f32.mrb[1].mxu0 }
 0x16f   : > { %vm659_vm2 = vcmp.gt.f32.partialorder %v655_v18, 0.0  ;;  %v661_v20 = vmul.f32 %v660_v17, %v655_v18 }
 0x171   : > { %v662_v21 = vsel %vm659_vm2, %v655_v18, %v661_v20 }
 0x172   : > { %1272 = vmatmul.mubr.msk.f32.vlgmr.msra.gmra.mrb[0].mxu1 %vm674_vm3, %v662_v21 }
 0x173   : > { %1293 = vmatprep.mubr.msk.f32.mxu1 %vm1638_vm0, %v1639_v1  ;;  %1318 = vmatpush3.bf16.msra.mxu1 %v1317_v40 }
 0x174   : > { %1319 = vmatprep.subr.bf16.mxu1 %v1637_v0 }
 0x177   : > { %1321 = vmatpush3.bf16.msra.mxu1 %v1320_v43 }
 0x19f   : > { %v978_v6 = vpop.trf.xlu1 }
 0x245   : > { %v744_v26 = vpop.f32.mrb[0].mxu1 }
 0x246   : > { %v745_v27 = vadd.f32 %v1222_v25, %v744_v26  ;;  %v1273_v28 = vpop.f32.mrb[1].mxu1 }
 0x248   : > { %1283 = vmatmul.mubr.msk.f32.vlgmr.msra.gmra.mrb[2].mxu0 %vm674_vm3, %v745_v27 }
 0x249   : > { %1298 = vmatprep.mubr.msk.f32.mxu0 %vm1638_vm0, %v1639_v1 }
 0x31b   : > { %v828_v32 = vpop.f32.mrb[2].mxu0 }
 0x31c   : > { %v829_v33 = vadd.f32 %v1224_v31, %v828_v32  ;;  %v1284_v34 = vpop.f32.mrb[3].mxu0 }
 0x31e   : > { %v832_v35 = vsel %vm674_vm3, %v829_v33, 0.0  ;;  %v835_v36 = vmul.f32 %v829_v33, %v829_v33 }
 0x31f   : > { %833 = vadd.xlane.f32.xlu0 %v832_v35 }
 0x320   : > { %v836_v37 = vsel %vm674_vm3, %v835_v36, 0.0 }
 0x323   : > { %837 = vadd.xlane.f32.xlu0 %v836_v37 }
 0x3ac   : > { %v834_v48 = vpop.xlane.xlu0 %833 }
 0x3ad   : > { %v839_v49 = vmul.f32 0.03125, %v834_v48 }
 0x3af   : > { %v841_v51 = vmul.f32 %v839_v49, %v839_v49  ;;  %v843_v55 = vsub.f32 %v829_v33, %v839_v49 }
 0x3b0   : > { %v838_v50 = vpop.xlane.xlu0 %837 }
 0x3b1   : > { %v840_v52 = vmul.f32 0.03125, %v838_v50 }
 0x3b3   : > { %v842_v53 = vsub.f32 %v840_v52, %v841_v51 }
 0x3b5   : > { %v844_v54 = vadd.f32 1e-05, %v842_v53 }
 0x3b7   : > { %1423 = vrsqrt.f32 %v844_v54 }
 0x3c1   : > { %v1424_v56 = vpop.eup %1423 }
 0x3c2   : > { %v846_v58 = vmul.f32 %v1424_v56, %v843_v55 }
 0x3c4   : > { %v854_v60 = vmul.f32 %v1226_v57, %v846_v58 }
 0x3c6   : > { %v862_v62 = vadd.f32 %v1227_v59, %v854_v60 }
 0x3c8   : > { %vm864_vm5 = vcmp.gt.f32.partialorder %v862_v62, 0.0  ;;  %v866_v63 = vmul.f32 %v865_v61, %v862_v62 }
 0x3ca   : > { %v867_v0 = vsel %vm864_vm5, %v862_v62, %v866_v63 }
 0x3cb   : > { %1294 = vmatmul.mubr.msk.f32.vlgmr.msra.gmra.mrb[2].mxu1 %vm674_vm3, %v867_v0 }
 0x49e   : > { %v948_v3 = vpop.f32.mrb[2].mxu1 }
 0x49f   : > { %v949_v4 = vadd.f32 %v1228_v2, %v948_v3  ;;  %v1295_v5 = vpop.f32.mrb[3].mxu1 }
 0x4a1   : > { %1297 = vmatpush3.msra.mxu0 %v949_v4 }
 0x4a2   : > { %1299 = vmatmul.mubr.msk.f32.vlgmr.msra.gmra.mrb[4].mxu0 %vm994_vm6, %v978_v6 }
 0x575   : > { %v1064_v8 = vpop.f32.mrb[4].mxu0 }
 0x576   : > { %v1068_v9 = vadd.f32 %v1064_v8, %v961_v7  ;;  %v1300_v10 = vpop.f32.mrb[5].mxu0 }
 0x578   : > { %1069 = vst [vmem:[%s561_s8] sm:$0x3] %v1068_v9 }
 0x579   : > { %1552 = shalt.err (!%p1549_p4)
}
 0x57a   : > { %s1553_s16 = scalar_lea.hbm %s2019_s14, 32  ;;  %s1557_s8 = scalar_lea.hbm %s2118_s22, 64 }
 0x57b   : > { %p1554_p2 = scmp.ne.s32.totalorder %s2019_s14, %s1553_s16  ;;  %p1558_p12 = scmp.lt.u32.totalorder %s2019_s14, %s2118_s22 }
 0x57c   : > { %p1559_p13 = scmp.lt.u32.totalorder %s1557_s8, %s1553_s16  ;;  %p1561_p6 = scmp.lt.u32.totalorder %s1553_s16, %s2019_s14 }
 0x57d   : > { %p1555_p8 = pnand %p1554_p2, %p1883_p10 }
 0x57e   : > { %p1560_p11 = por %p1559_p13, %p1558_p12 }
 0x57f   : > { %p1556_p1 = pneg %p1555_p8 }
 0x580   : > { %p1562_p3 = por %p1561_p6, %p1560_p11 }
 0x582   : > { %p1563_p5 = pnand %p1562_p3, %p1556_p1 }
 0x584   : > { %1566 = shalt.err (!%p1563_p5)
}
 0x585   : > { %1336 = dma.vmem_to_hbm [thread:$0]  (%p1883_p10), %s2021_s13, 32, %s2019_s14, %s1071_s7  }
 0x586 PF: > { %s2119_s23 = sld [smem:[#allocation17_spill]]  ;;  %s2120_s24 = sld [smem:[#allocation18_spill]] }
 0x587   : > { %p2122_p9 = scmp.ge.s32.totalorder %s1629_s12, 2 }
 0x58c   : > { %s1096_s11 = sand.u32 1, %s2119_s23   ;;  %p2121_p7 = scmp.ne.s32.totalorder %s2120_s24, 0 }
 0x58d   : > { %s1097_s29 = scalar_lea.sflag [#allocation6], %s1096_s11 }
 0x58e   : > { %p1353_p0 = pnand %p2122_p9, %p2121_p7 }
 0x590   : > { %1604 = dma.done.wait (!%p1353_p0), %s1097_s29, 32  }
 0x591   : > { %1606 = vsyncadd (!%p1353_p0), %s1097_s29, 4294967264  ;;  %s34_s12 = sadd.s32 1, %s1629_s12   ;;  %s2123_s5 = smov %s1895_s17 }
 0x592   : > { %p31_p4 = scmp.ge.s32.totalorder %s34_s12, 4   ;;  %s2124_s17 = smov %s1613_s18 }
 0x593   : > { %s2125_s18 = smov %s1617_s19  ;;  %s2126_s19 = smov %s2123_s5 }
 0x594   : > { %s2127_s20 = smov %s1625_s21  ;;  %s2128_s21 = smov %s2130_s30 }
 0x595   :  { %33 = sbr.rel (!%p31_p4) target bundleno = 18 (0x12), region = 140 }
 0x59c   :  { %1102 = vsyncpa [#allocation5], 1 }
 0x59d   :  { %1104 = vsyncpa [#allocation5 + $0x1], 1 }
 0x59e   :  { %1105 = vsyncpa [#allocation8], 1 }
 0x59f   :  { %1106 = vsyncpa [#allocation11], 1 }
 0x5a0   :  { %1107 = vsyncpa [#allocation6], 1 }
 0x5a1   :  { %1109 = vsyncpa [#allocation6 + $0x1], 1 }

</bundles_post_ra>
